<compile_context>
chip_gen: v6e
topology: v6e:2x2x1
jax: 0.10.0
libtpu: 0.0.40
codegen_flags: <defaults>
</compile_context>

<pallas_src>
import jax
import jax.numpy as jnp
from jax.experimental import pallas as pl
from jax.experimental.pallas import tpu as pltpu

NB_CLASSES = 10
D_IN, D_H1, D_H2 = 784, 384, 128
C_PAD = 128          # lane-dense padded class dimension for the output store
NEG_BIG = -1e9       # bias for padded classes; exp(NEG_BIG - m) underflows to exactly 0


def q_kernel(x_ref, w1_ref, b1_ref, w2_ref, b2_ref, w3_ref, b3_ref, out_ref):
    # x block arrives f32 from HBM; cast to bf16 in-kernel (VPU work hidden under MXU slack).
    x = x_ref[...].astype(jnp.bfloat16)
    # Layer 1: (TB, 784)bf16 @ (784, 384)bf16 -> f32 acc, + bias, relu
    h1 = jnp.dot(x, w1_ref[...], preferred_element_type=jnp.float32)
    h1 = jnp.maximum(h1 + b1_ref[...], 0.0)
    # Layer 2: (TB, 384) @ (384, 128)
    h2 = jnp.dot(h1.astype(jnp.bfloat16), w2_ref[...],
                 preferred_element_type=jnp.float32)
    h2 = jnp.maximum(h2 + b2_ref[...], 0.0)
    # Head, padded to 128 classes (pad columns: zero weights + NEG_BIG bias)
    logits = jnp.dot(h2.astype(jnp.bfloat16), w3_ref[...],
                     preferred_element_type=jnp.float32) + b3_ref[...]
    # Stable softmax over the (padded) class dim; padded columns contribute exactly 0.
    m = jnp.max(logits, axis=1, keepdims=True)
    e = jnp.exp(logits - m)
    denom = jnp.sum(e, axis=1, keepdims=True)
    # Exact divide (NOT approx reciprocal) so each row sums to 1 to f32 precision.
    out_ref[...] = (e / denom).astype(out_ref.dtype)


def _round_up(x, m):
    return (x + m - 1) // m * m


def prepare_params(params):
    """One-time weight prep (hoisted out of the per-forward path):
    bf16 weights, f32 biases, head zero-padded 10 -> 128 with NEG_BIG pad bias."""
    w1, b1, w2, b2, w3, b3 = params
    bf = jnp.bfloat16
    w3_p = jnp.pad(w3.astype(bf), ((0, 0), (0, C_PAD - NB_CLASSES)))
    b3_p = jnp.pad(b3, ((0, 0), (0, C_PAD - NB_CLASSES)), constant_values=NEG_BIG)
    return (w1.astype(bf), b1, w2.astype(bf), b2, w3_p, b3_p)


def q_forward(x, prepared_params, *, tile_b=1024):
    """x: (B, 784) float32. prepared_params: output of prepare_params()."""
    w1, b1, w2, b2, w3, b3 = prepared_params
    B = x.shape[0]

    # Batch tile: multiple of 8 (sublane), capped at tile_b, and clamped so the grid
    # has >=2 steps whenever B allows it (lets the "parallel" axis use both v7x TCs).
    b_round = _round_up(B, 8)
    tb = min(tile_b, max(8, _round_up(pl.cdiv(b_round, 2), 8)))
    b_pad = _round_up(B, tb)
    if b_pad != B:
        x = jnp.pad(x, ((0, b_pad - B), (0, 0)))

    grid = (b_pad // tb,)

    def resident(shape):
        # Constant index_map: DMA'd once, VMEM-resident, single-buffered.
        return pl.BlockSpec(shape, lambda i: (0, 0), pipeline_mode=pl.Buffered(1))

    flops = 2 * b_pad * (D_IN * D_H1 + D_H1 * D_H2 + D_H2 * C_PAD)
    bytes_accessed = (
        x.size * 4
        + (w1.size + w2.size + w3.size) * 2
        + (b1.size + b2.size + b3.size) * 4
        + b_pad * C_PAD * 4
    )

    out = pl.pallas_call(
        q_kernel,
        out_shape=jax.ShapeDtypeStruct((b_pad, C_PAD), jnp.float32),
        grid_spec=pltpu.PrefetchScalarGridSpec(
            num_scalar_prefetch=0,
            grid=grid,
            in_specs=[
                pl.BlockSpec((tb, D_IN), lambda i: (i, 0)),  # x tiles stream / pipeline
                resident((D_IN, D_H1)),
                resident((1, D_H1)),
                resident((D_H1, D_H2)),
                resident((1, D_H2)),
                resident((D_H2, C_PAD)),
                resident((1, C_PAD)),
            ],
            out_specs=pl.BlockSpec((tb, C_PAD), lambda i: (i, 0)),
        ),
        compiler_params=pltpu.CompilerParams(
            dimension_semantics=("parallel",),   # batch tiles shard across v7x's 2 TCs
            vmem_limit_bytes=28 * 1024 * 1024,   # headroom for tb=1024 on v5e's 16 MiB default
        ),
        cost_estimate=pl.CostEstimate(
            flops=flops,
            transcendentals=b_pad * C_PAD,
            bytes_accessed=bytes_accessed,
        ),
    )(x, w1, b1, w2, b2, w3, b3)

    # Slice away batch padding and the padded class columns (module returns (B, 10) probs).
    return out[:B, :NB_CLASSES]


def init_params(key):
    """Deterministic init mimicking torch.nn.Linear default (U[-1/sqrt(fan_in), +1/sqrt(fan_in)]).
    Weights stored as (in_features, out_features), biases as (1, out_features)."""
    def linear(key, fan_in, fan_out):
        kw, kb = jax.random.split(key)
        bound = 1.0 / jnp.sqrt(fan_in)
        w = jax.random.uniform(kw, (fan_in, fan_out), jnp.float32, -bound, bound)
        b = jax.random.uniform(kb, (1, fan_out), jnp.float32, -bound, bound)
        return w, b

    k1, k2, k3 = jax.random.split(key, 3)
    w1, b1 = linear(k1, D_IN, D_H1)
    w2, b2 = linear(k2, D_H1, D_H2)
    w3, b3 = linear(k3, D_H2, NB_CLASSES)
    return w1, b1, w2, b2, w3, b3


def q_ref(x, params):
    """Pure-JAX reference mirroring the kernel's bf16-operand / f32-accumulate numerics."""
    w1, b1, w2, b2, w3, b3 = params
    bf = jnp.bfloat16
    h1 = jnp.maximum(
        jnp.dot(x.astype(bf), w1.astype(bf), preferred_element_type=jnp.float32) + b1, 0.0)
    h2 = jnp.maximum(
        jnp.dot(h1.astype(bf), w2.astype(bf), preferred_element_type=jnp.float32) + b2, 0.0)
    logits = jnp.dot(h2.astype(bf), w3.astype(bf),
                     preferred_element_type=jnp.float32) + b3
    return jax.nn.softmax(logits, axis=1)


if __name__ == "__main__":
    key = jax.random.PRNGKey(0)
    kp, kx, kx2 = jax.random.split(key, 3)
    params = init_params(kp)
    prepped = prepare_params(params)   # weight prep done once, reused across forwards

    # Batch of 16 -> two grid steps of 8 (exercises the >=2-step parallel grid).
    B = 16
    x = jax.random.normal(kx, (B, D_IN), jnp.float32)
    out = jax.block_until_ready(q_forward(x, prepped))
    ref = q_ref(x, params)
    assert out.shape == (B, NB_CLASSES)
    assert jnp.allclose(out, ref, atol=2e-3, rtol=2e-3)
    assert jnp.allclose(jnp.sum(out, axis=1), 1.0, atol=1e-3)

    # Uneven batch with small tile to exercise multi-tile grid + batch padding path.
    B2 = 20
    x2 = jax.random.normal(kx2, (B2, D_IN), jnp.float32)
    out2 = jax.block_until_ready(q_forward(x2, prepped, tile_b=8))
    ref2 = q_ref(x2, params)
    assert out2.shape == (B2, NB_CLASSES)
    assert jnp.allclose(out2, ref2, atol=2e-3, rtol=2e-3)
    assert jnp.allclose(jnp.sum(out2, axis=1), 1.0, atol=1e-3)

    print("KERNEL_OK")
</pallas_src>

<mosaic_0001>
module attributes {stable_mosaic.version = 11 : i64} {
  func.func @q_kernel(%arg0: i32, %arg1: memref<8x784xf32, #tpu.memory_space<vmem>>, %arg2: memref<784x384xbf16, #tpu.memory_space<vmem>>, %arg3: memref<1x384xf32, #tpu.memory_space<vmem>>, %arg4: memref<384x128xbf16, #tpu.memory_space<vmem>>, %arg5: memref<1x128xf32, #tpu.memory_space<vmem>>, %arg6: memref<128x128xbf16, #tpu.memory_space<vmem>>, %arg7: memref<1x128xf32, #tpu.memory_space<vmem>>, %arg8: memref<8x128xf32, #tpu.memory_space<vmem>>) attributes {dimension_semantics = [#tpu.dimension_semantics<parallel>], iteration_bounds = array<i64: 2>, scalar_prefetch = 0 : i64, scratch_operands = 0 : i64, tpu.core_type = #tpu.core_type<tc>, window_params = [{transform_indices = @transform_0, window_bounds = array<i64: 8, 784>}, {pipeline_mode = #tpu.pipeline_mode<synchronous>, transform_indices = @transform_1, window_bounds = array<i64: 784, 384>}, {pipeline_mode = #tpu.pipeline_mode<synchronous>, transform_indices = @transform_2, window_bounds = array<i64: 1, 384>}, {pipeline_mode = #tpu.pipeline_mode<synchronous>, transform_indices = @transform_3, window_bounds = array<i64: 384, 128>}, {pipeline_mode = #tpu.pipeline_mode<synchronous>, transform_indices = @transform_4, window_bounds = array<i64: 1, 128>}, {pipeline_mode = #tpu.pipeline_mode<synchronous>, transform_indices = @transform_5, window_bounds = array<i64: 128, 128>}, {pipeline_mode = #tpu.pipeline_mode<synchronous>, transform_indices = @transform_6, window_bounds = array<i64: 1, 128>}, {transform_indices = @transform_7, window_bounds = array<i64: 8, 128>}]} {
    %c0 = arith.constant 0 : index
    %c0_0 = arith.constant 0 : index
    %0 = vector.load %arg1[%c0, %c0_0] : memref<8x784xf32, #tpu.memory_space<vmem>>, vector<8x784xf32>
    %1 = arith.truncf %0 : vector<8x784xf32> to vector<8x784xbf16>
    %c0_1 = arith.constant 0 : index
    %c0_2 = arith.constant 0 : index
    %2 = vector.load %arg2[%c0_1, %c0_2] : memref<784x384xbf16, #tpu.memory_space<vmem>>, vector<784x384xbf16>
    %cst = arith.constant dense<0.000000e+00> : vector<8x384xf32>
    %3 = tpu.matmul %1, %2, %cst {dimension_numbers = #tpu.dot_dimension_numbers<[1], [0], [0], [1], [0, 0, 1, 1], [], []>} : vector<8x784xbf16>, vector<784x384xbf16>, vector<8x384xf32> -> vector<8x384xf32>
    %c0_3 = arith.constant 0 : index
    %c0_4 = arith.constant 0 : index
    %4 = vector.load %arg3[%c0_3, %c0_4] : memref<1x384xf32, #tpu.memory_space<vmem>>, vector<1x384xf32>
    %5 = vector.broadcast %4 : vector<1x384xf32> to vector<8x384xf32>
    %6 = arith.addf %3, %5 : vector<8x384xf32>
    %cst_5 = arith.constant 0.000000e+00 : f32
    %7 = vector.broadcast %cst_5 : f32 to vector<8x384xf32>
    %8 = arith.maximumf %6, %7 : vector<8x384xf32>
    %9 = arith.truncf %8 : vector<8x384xf32> to vector<8x384xbf16>
    %c0_6 = arith.constant 0 : index
    %c0_7 = arith.constant 0 : index
    %10 = vector.load %arg4[%c0_6, %c0_7] : memref<384x128xbf16, #tpu.memory_space<vmem>>, vector<384x128xbf16>
    %cst_8 = arith.constant dense<0.000000e+00> : vector<8x128xf32>
    %11 = tpu.matmul %9, %10, %cst_8 {dimension_numbers = #tpu.dot_dimension_numbers<[1], [0], [0], [1], [0, 0, 1, 1], [], []>} : vector<8x384xbf16>, vector<384x128xbf16>, vector<8x128xf32> -> vector<8x128xf32>
    %c0_9 = arith.constant 0 : index
    %c0_10 = arith.constant 0 : index
    %12 = vector.load %arg5[%c0_9, %c0_10] : memref<1x128xf32, #tpu.memory_space<vmem>>, vector<1x128xf32>
    %13 = vector.broadcast %12 : vector<1x128xf32> to vector<8x128xf32>
    %14 = arith.addf %11, %13 : vector<8x128xf32>
    %cst_11 = arith.constant 0.000000e+00 : f32
    %15 = vector.broadcast %cst_11 : f32 to vector<8x128xf32>
    %16 = arith.maximumf %14, %15 : vector<8x128xf32>
    %17 = arith.truncf %16 : vector<8x128xf32> to vector<8x128xbf16>
    %c0_12 = arith.constant 0 : index
    %c0_13 = arith.constant 0 : index
    %18 = vector.load %arg6[%c0_12, %c0_13] : memref<128x128xbf16, #tpu.memory_space<vmem>>, vector<128x128xbf16>
    %cst_14 = arith.constant dense<0.000000e+00> : vector<8x128xf32>
    %19 = tpu.matmul %17, %18, %cst_14 {dimension_numbers = #tpu.dot_dimension_numbers<[1], [0], [0], [1], [0, 0, 1, 1], [], []>} : vector<8x128xbf16>, vector<128x128xbf16>, vector<8x128xf32> -> vector<8x128xf32>
    %c0_15 = arith.constant 0 : index
    %c0_16 = arith.constant 0 : index
    %20 = vector.load %arg7[%c0_15, %c0_16] : memref<1x128xf32, #tpu.memory_space<vmem>>, vector<1x128xf32>
    %21 = vector.broadcast %20 : vector<1x128xf32> to vector<8x128xf32>
    %22 = arith.addf %19, %21 : vector<8x128xf32>
    %cst_17 = arith.constant dense<0xFF800000> : vector<8xf32>
    %23 = vector.multi_reduction <maximumf>, %22, %cst_17 [1] : vector<8x128xf32> to vector<8xf32>
    %24 = vector.shape_cast %23 : vector<8xf32> to vector<8x1xf32>
    %25 = vector.broadcast %24 : vector<8x1xf32> to vector<8x128xf32>
    %26 = arith.subf %22, %25 : vector<8x128xf32>
    %27 = math.exp %26 : vector<8x128xf32>
    %cst_18 = arith.constant dense<0.000000e+00> : vector<8xf32>
    %28 = vector.multi_reduction <add>, %27, %cst_18 [1] : vector<8x128xf32> to vector<8xf32>
    %29 = vector.shape_cast %28 : vector<8xf32> to vector<8x1xf32>
    %30 = vector.broadcast %29 : vector<8x1xf32> to vector<8x128xf32>
    %31 = arith.divf %27, %30 : vector<8x128xf32>
    %c0_19 = arith.constant 0 : index
    %c0_20 = arith.constant 0 : index
    %32 = vector.load %arg8[%c0_19, %c0_20] : memref<8x128xf32, #tpu.memory_space<vmem>>, vector<8x128xf32>
    tpu.vector_store %arg8[%c0_19, %c0_20], %31 {strides = array<i32>} : memref<8x128xf32, #tpu.memory_space<vmem>>, vector<8x128xf32>,
    return
  }
  func.func @transform_0(%arg0: i32) -> (i32, i32) {
    %c0_i32 = arith.constant 0 : i32
    %c0_i32_0 = arith.constant 0 : i32
    return %arg0, %c0_i32 : i32, i32
  }
  func.func @transform_1(%arg0: i32) -> (i32, i32) {
    %c0_i32 = arith.constant 0 : i32
    %c0_i32_0 = arith.constant 0 : i32
    %c0_i32_1 = arith.constant 0 : i32
    return %c0_i32, %c0_i32_0 : i32, i32
  }
  func.func @transform_2(%arg0: i32) -> (i32, i32) {
    %c0_i32 = arith.constant 0 : i32
    %c0_i32_0 = arith.constant 0 : i32
    %c0_i32_1 = arith.constant 0 : i32
    return %c0_i32, %c0_i32_0 : i32, i32
  }
  func.func @transform_3(%arg0: i32) -> (i32, i32) {
    %c0_i32 = arith.constant 0 : i32
    %c0_i32_0 = arith.constant 0 : i32
    %c0_i32_1 = arith.constant 0 : i32
    return %c0_i32, %c0_i32_0 : i32, i32
  }
  func.func @transform_4(%arg0: i32) -> (i32, i32) {
    %c0_i32 = arith.constant 0 : i32
    %c0_i32_0 = arith.constant 0 : i32
    %c0_i32_1 = arith.constant 0 : i32
    return %c0_i32, %c0_i32_0 : i32, i32
  }
  func.func @transform_5(%arg0: i32) -> (i32, i32) {
    %c0_i32 = arith.constant 0 : i32
    %c0_i32_0 = arith.constant 0 : i32
    %c0_i32_1 = arith.constant 0 : i32
    return %c0_i32, %c0_i32_0 : i32, i32
  }
  func.func @transform_6(%arg0: i32) -> (i32, i32) {
    %c0_i32 = arith.constant 0 : i32
    %c0_i32_0 = arith.constant 0 : i32
    %c0_i32_1 = arith.constant 0 : i32
    return %c0_i32, %c0_i32_0 : i32, i32
  }
  func.func @transform_7(%arg0: i32) -> (i32, i32) {
    %c0_i32 = arith.constant 0 : i32
    %c0_i32_0 = arith.constant 0 : i32
    return %arg0, %c0_i32 : i32, i32
  }
}

</mosaic_0001>

<bundles_post_ra>
// kernel: tpu_custom_call.1
= control target key start
LH: loop header
LB: loop body
LE: loop exit
PB: predicated region body
PF: predicated region fallthrough
CT: control target
= control target key end

     0   :  { %s3345_s0 = inlined_call_operand.hbm [shape: f32[16,784], index: 0, kind: input, shape index: {}]   ;;  %s3346_s1 = inlined_call_operand.hbm [shape: bf16[784,384], index: 1, kind: input, shape index: {}]   ;;  %s3347_s2 = inlined_call_operand.vmem [shape: f32[1,384], index: 2, kind: input, shape index: {}]   ;;  %s3348_s3 = inlined_call_operand.hbm [shape: bf16[384,128], index: 3, kind: input, shape index: {}]   ;;  %s3349_s4 = inlined_call_operand.vmem [shape: f32[1,128], index: 4, kind: input, shape index: {}]   ;;  %s3350_s5 = inlined_call_operand.hbm [shape: bf16[128,128], index: 5, kind: input, shape index: {}]   ;;  %s3351_s6 = inlined_call_operand.vmem [shape: f32[1,128], index: 6, kind: input, shape index: {}]   ;;  %s3352_s7 = inlined_call_operand.hbm [shape: f32[16,128], index: 7, kind: output, shape index: {}]  }
   0x1   :  { %3357 = sst [smem:[#allocation15_spill]] %s3346_s1 }
   0x2   :  { %3358 = sst [smem:[#allocation16_spill]] %s3348_s3 }
   0x3   :  { %12 = vsyncpa [#allocation3], 0 }
   0x4   :  { %14 = vsyncpa [#allocation3 + $0x1], 0 }
   0x5   :  { %15 = vsyncpa [#allocation6], 0 }
   0x6   :  { %16 = vsyncpa [#allocation9], 0 }
   0x7   :  { %17 = vsyncpa [#allocation4], 0 }
   0x8   :  { %19 = vsyncpa [#allocation4 + $0x1], 0  ;;  %s3104_s24 = smov 0   ;;  %s3106_s25 = smov 0  }
   0x9   :  { %s3108_s26 = smov 0   ;;  %s3110_s27 = smov 0  }
   0xa LB: > { %s3125_s28 = sadd.s32 4294967295, %s3050_s27   ;;  %s2200_s29 = sadd.s32 4294967294, %s3050_s27   ;;  %s3050_s27 = sphi %s3110_s27, %s3380_s27   ;;  %s3046_s26 = sphi %s3108_s26, %s3379_s26   ;;  %s3042_s25 = sphi %s3106_s25, %s3378_s25   ;;  %s3038_s24 = sphi %s3104_s24, %s3377_s24  }
   0xb   : > { %p45_p0 = scmp.ne.s32.totalorder %s3042_s25, %s3038_s24  ;;  %p3353_p1 = scmp.eq.s32.totalorder %s3125_s28, 0 }
   0xc   : > { %p201_p3 = scmp.eq.s32.totalorder %s2200_s29, 1  ;;  %p2201_p5 = scmp.ge.s32.totalorder %s3050_s27, 1 }
   0xd   : > { %p3134_p4 = por %p3353_p1, %p45_p0  ;;  %p208_p7 = scmp.lt.s32.totalorder %s3050_s27, 3 }
   0xe   : > { %p3139_p6 = por %p201_p3, %p45_p0  ;;  %s3052_s10 = smov [#allocation5]  }
   0xf   : > { %s3359_s30 = scalar_select %p3134_p4, 1, 0 }
  0x10   : > { %s3360_s8 = scalar_select %p3139_p6, 1, 0 }
  0x11   : > { %p3144_p8 = pnand %p2201_p5, %p208_p7  ;;  %s220_s11 = sshll.u32 %s3052_s10, 4  ;;  %s221_s11 = int_to_ptr.vmem [resolvable:$true] %s220_s11 }
  0x12   : > { %s3053_s13 = smov [#allocation7]   ;;  %s2883_s15 = scalar_lea.vmem %s221_s11, 18816 }
  0x13   : > { %s3361_s9 = scalar_select %p3144_p8, 1, 0 }
  0x14   : > { %p2572_p9 = pneg %p3144_p8  ;;  %s236_s14 = sshll.u32 %s3053_s13, 4  ;;  %s237_s14 = int_to_ptr.vmem [resolvable:$true] %s236_s14 }
  0x15   : > { %p2884_p13 = scmp.ne.s32.totalorder %s221_s11, %s2883_s15  ;;  %p2891_p5 = scmp.lt.s32.totalorder %s221_s11, %s221_s11 }
  0x16   : > { %p3153_p11 = pnand %p2572_p9, %p3353_p1  ;;  %p2892_p7 = scmp.lt.s32.totalorder %s2883_s15, %s2883_s15 }
  0x18   : > { %p2874_p12 = pneg %p3153_p11  ;;  %p2893_p10 = por %p2892_p7, %p2891_p5 }
  0x1a   : > { %p2886_p0 = pnand %p2884_p13, %p2874_p12 }
  0x1c   : > { %p2887_p3 = pneg %p2886_p0 }
  0x1e   : > { %p2894_p9 = pnand %p2893_p10, %p2887_p3 }
  0x20   : > { %2897 = shalt.err (!%p2894_p9)
}
  0x21   : > { %s3054_s16 = smov 192   ;;  %s3055_s17 = smov 12  }
  0x22   : > { %s3363_s1 = sld [smem:[#allocation15_spill]]  ;;  %s2909_s20 = scalar_lea.vmem %s237_s14, 3072 }
  0x23   : > { %p2910_p1 = scmp.ne.s32.totalorder %s237_s14, %s2909_s20  ;;  %p2917_p2 = scmp.lt.s32.totalorder %s237_s14, %s237_s14 }
  0x24   : > { %p2918_p6 = scmp.lt.s32.totalorder %s2909_s20, %s2909_s20 }
  0x25   : > { %p2912_p13 = pnand %p2910_p1, %p2874_p12 }
  0x26   : > { %p2919_p5 = por %p2918_p6, %p2917_p2 }
  0x27   : > { %p2913_p0 = pneg %p2912_p13 }
  0x28   : > { %2575 = dma.hbm_to_vmem [thread:$0]  (!%p3153_p11), %s3363_s1, 18816, %s221_s11, [#allocation6], %s3054_s16, %s3054_s16, %s3055_s17  }
  0x29   : > { %p2920_p10 = pnand %p2919_p5, %p2913_p0 }
  0x2b   : > { %2923 = shalt.err (!%p2920_p10)
}
  0x2c   : > { %s3056_s21 = smov 64   ;;  %s3057_s22 = smov 4  }
  0x2d   : > { %s3364_s3 = sld [smem:[#allocation16_spill]]  ;;  %s3058_s10 = smov [#allocation8]  }
  0x2e   : > { %s252_s11 = sshll.u32 %s3058_s10, 4  ;;  %s3176_s13 = sadd.s32 1, %s3050_s27   ;;  %s253_s11 = int_to_ptr.vmem [resolvable:$true] %s252_s11 }
  0x2f   : > { %s2935_s15 = scalar_lea.vmem %s253_s11, 1024  ;;  %p2943_p3 = scmp.lt.s32.totalorder %s253_s11, %s253_s11 }
  0x30   : > { %p2936_p1 = scmp.ne.s32.totalorder %s253_s11, %s2935_s15  ;;  %p2944_p7 = scmp.lt.s32.totalorder %s2935_s15, %s2935_s15 }
  0x32   : > { %p2938_p2 = pnand %p2936_p1, %p2874_p12  ;;  %p2945_p9 = por %p2944_p7, %p2943_p3 }
  0x33   : > { %2578 = dma.hbm_to_vmem [thread:$0]  (!%p3153_p11), %s3364_s3, 3072, %s237_s14, [#allocation6], %s3056_s21, %s3056_s21, %s3057_s22  }
  0x34   : > { %p2939_p6 = pneg %p2938_p2 }
  0x36   : > { %p2946_p13 = pnand %p2945_p9, %p2939_p6 }
  0x38   : > { %2949 = shalt.err (!%p2946_p13)
}
  0x39   : > { %2581 = dma.hbm_to_vmem [thread:$0]  (!%p3153_p11), %s3350_s5, 1024, %s253_s11, [#allocation9], %s3056_s21, %s3056_s21, %s3057_s22  }
  0x3a   : > { %s29_s17 = ssub.s32 %s3050_s27, %s3176_s13  ;;  %s32_s18 = sadd.s32 1, %s3046_s26 }
  0x3b   : > { %p30_p12 = scmp.eq.s32.totalorder %s29_s17, 0  ;;  %p39_p0 = scmp.ne.s32.totalorder %s3046_s26, %s3042_s25 }
  0x3c   : > { %p40_p5 = scmp.eq.s32.totalorder %s3050_s27, 0  ;;  %p2593_p10 = scmp.lt.s32.totalorder %s3050_s27, 2 }
  0x3d   : > { %s3194_s12 = scalar_select %p30_p12, %s3046_s26, %s32_s18  }
  0x3e   : > { %p41_p1 = por %p40_p5, %p39_p0  ;;  %p3365_p2 = scmp.eq.s32.totalorder %s3125_s28, 1 }
  0x3f   : > { %s269_s20 = sand.u32 1, %s3046_s26   ;;  %s2554_s23 = smul.u32 896, %s3050_s27 }
  0x40   : > { %p3198_p6 = por %p3365_p2, %p39_p0  ;;  %s2553_s29 = smul.u32 56, %s269_s20 }
  0x41   : > { %p3204_p3 = pnand %p2593_p10, %p41_p1  ;;  %s3211_s11 = scalar_lea.hbm %s3345_s0, %s2554_s23 }
  0x42   : > { %s3366_s19 = scalar_select %p3198_p6, 1, 0 }
  0x43   : > { %s273_s15 = scalar_lea.vmem [#allocation2], %s2553_s29  ;;  %s270_s14 = scalar_lea.sflag [#allocation3], %s269_s20 }
  0x44   : > { %s281_s16 = sshll.u32 %s273_s15, 4  ;;  %s2950_s17 = scalar_lea.hbm %s3211_s11, 896  ;;  %s282_s16 = int_to_ptr.vmem [resolvable:$true] %s281_s16 }
  0x45   : > { %p2951_p11 = scmp.ne.s32.totalorder %s3211_s11, %s2950_s17  ;;  %p2952_p7 = pneg %p3204_p3 }
  0x46   : > { %s2955_s21 = scalar_lea.hbm %s3345_s0, 1792  ;;  %p2956_p12 = scmp.lt.s32.totalorder %s3211_s11, %s3345_s0 }
  0x47   : > { %p2953_p9 = pnand %p2952_p7, %p2951_p11  ;;  %p2957_p0 = scmp.lt.s32.totalorder %s2955_s21, %s2950_s17 }
  0x49   : > { %p2954_p13 = pneg %p2953_p9  ;;  %p2958_p5 = por %p2957_p0, %p2956_p12 }
  0x4b   : > { %p2959_p10 = pnand %p2958_p5, %p2954_p13 }
  0x4d   : > { %2962 = shalt.err (!%p2959_p10)
}
  0x4e   : > { %s2963_s29 = scalar_lea.vmem %s282_s16, 896  ;;  %s3059_s20 = smov [#allocation2]  }
  0x4f   : > { %p2964_p1 = scmp.ne.s32.totalorder %s282_s16, %s2963_s29  ;;  %s2968_s15 = sshll.u32 %s3059_s20, 4  ;;  %s2969_s15 = int_to_ptr.vmem [resolvable:$false] %s2968_s15 }
  0x50   : > { %s2970_s3 = scalar_lea.vmem %s2969_s15, 1792  ;;  %p2971_p11 = scmp.lt.s32.totalorder %s282_s16, %s2969_s15 }
  0x51   : > { %p2966_p2 = pnand %p2964_p1, %p2952_p7  ;;  %p2972_p9 = scmp.lt.s32.totalorder %s2970_s3, %s2963_s29 }
  0x53   : > { %p2967_p6 = pneg %p2966_p2  ;;  %p2973_p4 = por %p2972_p9, %p2971_p11 }
  0x55   : > { %p2974_p8 = pnand %p2973_p4, %p2967_p6 }
  0x57   : > { %2977 = shalt.err (!%p2974_p8)
}
  0x58   : > { %2585 = dma.hbm_to_vmem [thread:$0]  (!%p3204_p3), %s3211_s11, 896, %s282_s16, %s270_s14  }
  0x59   : > { %p3368_p13 = scmp.ne.s32.totalorder %s3361_s9, 0 }
  0x5a   : > { %s3230_s1 = sand.u32 (!%p3368_p13), 1, %s3042_s25   ;;  %p3369_p7 = scmp.ne.s32.totalorder (!%p3368_p13), %s3359_s30, 0 }
  0x5b   : > { %290 = sbr.rel (%p3368_p13) target bundleno = 1194 (0x4aa), region = 48  ;;  %s293_s18 = scalar_lea.sflag (!%p3368_p13), [#allocation3], %s3230_s1 }
  0x5c   : > { %s2555_s17 = smul.u32 (!%p3368_p13), 56, %s3230_s1 }
  0x5e   : > { %s3234_s21 = scalar_lea.vmem (!%p3368_p13), [#allocation2], %s2555_s17 }
  0x60   : > { %3021 = dma.done.wait (%p3369_p7), %s293_s18, 896  }
  0x61   : > { %3023 = vsyncadd (%p3369_p7), %s293_s18, 4294966400  ;;  %p3370_p4 = scmp.eq.s32.totalorder %s3125_s28, 0 }
  0x63   : > { %3025 = dma.done.wait (%p3370_p4), [#allocation6], 21888   ;;  %p3371_p8 = pmov %p3370_p4 }
  0x64   : > { %p3372_p6 = pmov %p3370_p4 }
  0x65   : > { %3027 = vsyncadd (%p3371_p8), [#allocation6], 4294945408 }
  0x66   : > { %3029 = dma.done.wait (%p3372_p6), [#allocation9], 1024   ;;  %p3373_p3 = pmov %p3370_p4 }
  0x67   : > { %v2640_v0 = vld [vmem:[#allocation5 + $0xac] ss:$12 sps:$4 sm:$0xff]   ;;  %v2642_v1 = vld [vmem:[#allocation5 + $0xa8] ss:$12 sps:$4 sm:$0xff]   ;;  %v2648_v5 = vld [vmem:[#allocation5 + $0x90] ss:$12 sps:$4 sm:$0xff]  }
  0x68   : > { %3031 = vsyncadd (%p3373_p3), [#allocation9], 4294966272  ;;  %1355 = vmatprep.subr.bf16.mxu0 %v2640_v0  ;;  %v2643_v2 = vld [vmem:[#allocation5 + $0x22c] ss:$12 sps:$4 sm:$0xff]   ;;  %v2645_v3 = vld [vmem:[#allocation5 + $0x228] ss:$12 sps:$4 sm:$0xff]  }
  0x69   : > { %1356 = vmatpush1.bf16.msra.mxu0 %v2642_v1  ;;  %v2646_v4 = vld [vmem:[#allocation5 + $0x94] ss:$12 sps:$4 sm:$0xff]   ;;  %1396 = vmatprep.subr.bf16.mxu1 %v2643_v2  ;;  %v2651_v7 = vld [vmem:[#allocation5 + $0x210] ss:$12 sps:$4 sm:$0xff]   ;;  %v2654_v9 = vld [vmem:[#allocation5 + $0x78] ss:$12 sps:$4 sm:$0xff]  }
  0x6a   : > { %v2649_v6 = vld [vmem:[#allocation5 + $0x214] ss:$12 sps:$4 sm:$0xff]   ;;  %1397 = vmatpush1.bf16.msra.mxu1 %v2645_v3  ;;  %1357 = vmatprep.subr.bf16.mxu0 %v2646_v4  ;;  %v2652_v8 = vld [vmem:[#allocation5 + $0x7c] ss:$12 sps:$4 sm:$0xff]   ;;  %v2658_v11 = vld [vmem:[#allocation5 + $0x64] ss:$12 sps:$4 sm:$0xff]  }
  0x6b   : > { %1398 = vmatprep.subr.bf16.mxu1 %v2649_v6  ;;  %v2655_v10 = vld [vmem:[#allocation5 + $0x1fc] ss:$12 sps:$4 sm:$0xff]   ;;  %v2657_v12 = vld [vmem:[#allocation5 + $0x1f8] ss:$12 sps:$4 sm:$0xff]   ;;  %v2660_v14 = vld [vmem:[#allocation5 + $0x60] ss:$12 sps:$4 sm:$0xff]  }
  0x6c   : > { %v2661_v13 = vld [vmem:[#allocation5 + $0x1e4] ss:$12 sps:$4 sm:$0xff]   ;;  %v2664_v15 = vld [vmem:[#allocation5 + $0x4c] ss:$12 sps:$4 sm:$0xff]   ;;  %v2666_v18 = vld [vmem:[#allocation5 + $0x48] ss:$12 sps:$4 sm:$0xff]  }
  0x6d   : > { %1358 = vmatpush1.bf16.msra.mxu0 %v2648_v5  ;;  %v2663_v16 = vld [vmem:[#allocation5 + $0x1e0] ss:$12 sps:$4 sm:$0xff]   ;;  %v2669_v20 = vld [vmem:[#allocation5 + $0x1c8] ss:$12 sps:$4 sm:$0xff]   ;;  %v2672_v22 = vld [vmem:[#allocation5 + $0x30] ss:$12 sps:$4 sm:$0xff]  }
  0x6e   : > { %1359 = vmatprep.subr.bf16.mxu0 %v2652_v8  ;;  %1399 = vmatpush1.bf16.msra.mxu1 %v2651_v7  ;;  %v2667_v17 = vld [vmem:[#allocation5 + $0x1cc] ss:$12 sps:$4 sm:$0xff]   ;;  %v2670_v19 = vld [vmem:[#allocation5 + $0x34] ss:$12 sps:$4 sm:$0xff]   ;;  %v2676_v23 = vld [vmem:[#allocation5 + $0x1c] ss:$12 sps:$4 sm:$0xff]  }
  0x6f   : > { %1400 = vmatprep.subr.bf16.mxu1 %v2655_v10  ;;  %v2673_v21 = vld [vmem:[#allocation5 + $0x1b4] ss:$12 sps:$4 sm:$0xff]   ;;  %v2675_v24 = vld [vmem:[#allocation5 + $0x1b0] ss:$12 sps:$4 sm:$0xff]   ;;  %v2678_v26 = vld [vmem:[#allocation5 + $0x18] ss:$12 sps:$4 sm:$0xff]  }
  0x70   : > { %v2679_v25 = vld [vmem:[#allocation5 + $0x19c] ss:$12 sps:$4 sm:$0xff]   ;;  %v2682_v27 = vld [vmem:[#allocation5 + $0x4] ss:$12 sps:$4 sm:$0xff]   ;;  %v2684_v30 = vld [vmem:[#allocation5] ss:$12 sps:$4 sm:$0xff]  }
  0x71   : > { %1360 = vmatpush1.bf16.msra.mxu0 %v2654_v9  ;;  %v2681_v28 = vld [vmem:[#allocation5 + $0x198] ss:$12 sps:$4 sm:$0xff]   ;;  %v2687_v32 = vld [vmem:[#allocation5 + $0x180] ss:$12 sps:$4 sm:$0xff]   ;;  %v2690_v34 = vld [vmem:[#allocation5 + $0x168] ss:$12 sps:$4 sm:$0xff]  }
  0x72   : > { %1361 = vmatprep.subr.bf16.mxu0 %v2658_v11  ;;  %1401 = vmatpush1.bf16.msra.mxu1 %v2657_v12  ;;  %v2685_v29 = vld [vmem:[#allocation5 + $0x184] ss:$12 sps:$4 sm:$0xff]   ;;  %v2688_v31 = vld [vmem:[#allocation5 + $0x16c] ss:$12 sps:$4 sm:$0xff]   ;;  %v2694_v35 = vld [vmem:[#allocation5 + $0x154] ss:$12 sps:$4 sm:$0xff]  }
  0x73   : > { %1402 = vmatprep.subr.bf16.mxu1 %v2661_v13  ;;  %v2691_v33 = vld [vmem:[#allocation5 + $0x2ec] ss:$12 sps:$4 sm:$0xff]   ;;  %v2693_v36 = vld [vmem:[#allocation5 + $0x2e8] ss:$12 sps:$4 sm:$0xff]   ;;  %v2696_v38 = vld [vmem:[#allocation5 + $0x150] ss:$12 sps:$4 sm:$0xff]  }
  0x74   : > { %v2697_v37 = vld [vmem:[#allocation5 + $0x2d4] ss:$12 sps:$4 sm:$0xff]   ;;  %v2700_v39 = vld [vmem:[#allocation5 + $0x13c] ss:$12 sps:$4 sm:$0xff]   ;;  %v2702_v42 = vld [vmem:[#allocation5 + $0x138] ss:$12 sps:$4 sm:$0xff]  }
  0x75   : > { %1362 = vmatpush1.bf16.msra.mxu0 %v2660_v14  ;;  %v2699_v40 = vld [vmem:[#allocation5 + $0x2d0] ss:$12 sps:$4 sm:$0xff]   ;;  %v2705_v44 = vld [vmem:[#allocation5 + $0x2b8] ss:$12 sps:$4 sm:$0xff]   ;;  %v2708_v47 = vld [vmem:[#allocation5 + $0x120] ss:$12 sps:$4 sm:$0xff]  }
  0x76   : > { %1363 = vmatprep.subr.bf16.mxu0 %v2664_v15  ;;  %1403 = vmatpush1.bf16.msra.mxu1 %v2663_v16  ;;  %v2703_v41 = vld [vmem:[#allocation5 + $0x2bc] ss:$12 sps:$4 sm:$0xff]   ;;  %v2706_v43 = vld [vmem:[#allocation5 + $0x124] ss:$12 sps:$4 sm:$0xff]   ;;  %v2712_v49 = vld [vmem:[#allocation5 + $0x10c] ss:$12 sps:$4 sm:$0xff]  }
  0x77   : > { %1404 = vmatprep.subr.bf16.mxu1 %v2667_v17  ;;  %v2709_v45 = vld [vmem:[#allocation5 + $0x2a4] ss:$12 sps:$4 sm:$0xff]   ;;  %v2711_v51 = vld [vmem:[#allocation5 + $0x2a0] ss:$12 sps:$4 sm:$0xff]   ;;  %v2714_v54 = vld [vmem:[#allocation5 + $0x108] ss:$12 sps:$4 sm:$0xff]  }
  0x78   : > { %v341_v46 = vld [vmem:[%s3234_s21 + $0x8] sm:$0xff]  ;;  %v343_v50 = vld [vmem:[%s3234_s21 + $0x18] sm:$0xff]  ;;  %v340_v4 = vld [vmem:[%s3234_s21] sm:$0xff]  ;;  %vm1351_vm0 = vcmask 130048   ;;  %vm3062_vm1 = vmmov 0   ;;  %s2211_s14 = sshll.u32 %s3230_s1, 3 }
  0x79   : > { %1364 = vmatpush1.bf16.msra.mxu0 %v2666_v18  ;;  %v348_v48 = vpack.c.bf16 %v341_v46, %v341_v46  ;;  %v3250_v52 = vpack.c.bf16 %v343_v50, %v343_v50  ;;  %v2715_v53 = vld [vmem:[#allocation5 + $0x28c] ss:$12 sps:$4 sm:$0xff]   ;;  %v2718_v55 = vld [vmem:[#allocation5 + $0xf4] ss:$12 sps:$4 sm:$0xff]   ;;  %v2720_v58 = vld [vmem:[#allocation5 + $0xf0] ss:$12 sps:$4 sm:$0xff]   ;;  %v3255_v7 = vpack.c.bf16 %v340_v4, %v340_v4 }
  0x7a   : > { %1365 = vmatprep.subr.bf16.mxu0 %v2670_v19  ;;  %1405 = vmatpush1.bf16.msra.mxu1 %v2669_v20  ;;  %v2717_v56 = vld [vmem:[#allocation5 + $0x288] ss:$12 sps:$4 sm:$0xff]   ;;  %v2723_v60 = vld [vmem:[#allocation5 + $0x270] ss:$12 sps:$4 sm:$0xff]   ;;  %v2726_v62 = vld [vmem:[#allocation5 + $0xd8] ss:$12 sps:$4 sm:$0xff]  }
  0x7b   : > { %1406 = vmatprep.subr.bf16.mxu1 %v2673_v21  ;;  %1387 = vmatprep.mubr.bf16.mxu0 %v348_v48  ;;  %v2721_v57 = vld [vmem:[#allocation5 + $0x274] ss:$12 sps:$4 sm:$0xff]   ;;  %v2724_v59 = vld [vmem:[#allocation5 + $0xdc] ss:$12 sps:$4 sm:$0xff]   ;;  %v2729_v63 = vld [vmem:[#allocation5 + $0x258] ss:$12 sps:$4 sm:$0xff]  }
  0x7c   : > { %1428 = vmatprep.mubr.bf16.mxu1 %v3250_v52  ;;  %v2727_v61 = vld [vmem:[#allocation5 + $0x25c] ss:$12 sps:$4 sm:$0xff]   ;;  %v2730_v0 = vld [vmem:[#allocation5 + $0xc4] ss:$12 sps:$4 sm:$0xff]   ;;  %v2732_v1 = vld [vmem:[#allocation5 + $0xc0] ss:$12 sps:$4 sm:$0xff]  }
  0x7d   : > { %1366 = vmatpush1.bf16.msra.mxu0 %v2672_v22  ;;  %v2733_v2 = vld [vmem:[#allocation5 + $0x244] ss:$12 sps:$4 sm:$0xff]   ;;  %v2735_v3 = vld [vmem:[#allocation5 + $0x240] ss:$12 sps:$4 sm:$0xff]   ;;  %v2736_v9 = vld [vmem:[#allocation5 + $0x3a8] ss:$12 sps:$4 sm:$0xff]  }
  0x7e   : > { %1367 = vmatprep.subr.bf16.mxu0 %v2676_v23  ;;  %1407 = vmatpush1.bf16.msra.mxu1 %v2675_v24  ;;  %v2738_v5 = vld [vmem:[#allocation5 + $0x3ac] ss:$12 sps:$4 sm:$0xff]   ;;  %v2742_v8 = vld [vmem:[#allocation5 + $0x170] ss:$12 sps:$4 sm:$0xff]   ;;  %v2741_v11 = vld [vmem:[#allocation5 + $0x394] ss:$12 sps:$4 sm:$0xff]  }
  0x7f   : > { %1408 = vmatprep.subr.bf16.mxu1 %v2679_v25  ;;  %v342_v6 = vld [vmem:[%s3234_s21 + $0x10] sm:$0xff]  ;;  %v2757_v21 = vld [vmem:[#allocation5 + $0x128] ss:$12 sps:$4 sm:$0xff]   ;;  %s2396_s22 = sshll.u32 %s3125_s28, 7  ;;  %s338_s23 = scalar_lea.vmem [#allocation10], %s2211_s14 }
  0x80   : > { %v3257_v10 = vpack.c.bf16 %v342_v6, %v342_v6  ;;  %v2743_v12 = vld [vmem:[#allocation5 + $0xb0] ss:$12 sps:$4 sm:$0xff]   ;;  %v2747_v13 = vld [vmem:[#allocation5 + $0x158] ss:$12 sps:$4 sm:$0xff]   ;;  %v2752_v17 = vld [vmem:[#allocation5 + $0x140] ss:$12 sps:$4 sm:$0xff]   ;;  %s2099_s17 = scalar_lea.hbm %s3352_s7, %s2396_s22 }
  0x81   : > { %1368 = vmatpush1.bf16.msra.mxu0 %v2678_v26  ;;  %v2739_v14 = vld [vmem:[#allocation5 + $0x390] ss:$12 sps:$4 sm:$0xff]   ;;  %v2748_v16 = vld [vmem:[#allocation5 + $0x98] ss:$12 sps:$4 sm:$0xff]   ;;  %v2753_v20 = vld [vmem:[#allocation5 + $0x80] ss:$12 sps:$4 sm:$0xff]  }
  0x82   : > { %1369 = vmatprep.subr.bf16.mxu0 %v2682_v27  ;;  %1409 = vmatpush1.bf16.msra.mxu1 %v2681_v28  ;;  %v2746_v15 = vld [vmem:[#allocation5 + $0x37c] ss:$12 sps:$4 sm:$0xff]   ;;  %v2744_v18 = vld [vmem:[#allocation5 + $0x378] ss:$12 sps:$4 sm:$0xff]   ;;  %v2749_v22 = vld [vmem:[#allocation5 + $0x360] ss:$12 sps:$4 sm:$0xff]  }
  0x83   : > { %1410 = vmatprep.subr.bf16.mxu1 %v2685_v29  ;;  %v2751_v19 = vld [vmem:[#allocation5 + $0x364] ss:$12 sps:$4 sm:$0xff]   ;;  %v2756_v23 = vld [vmem:[#allocation5 + $0x34c] ss:$12 sps:$4 sm:$0xff]   ;;  %v2758_v24 = vld [vmem:[#allocation5 + $0x68] ss:$12 sps:$4 sm:$0xff]  }
  0x84   : > { %v2762_v25 = vld [vmem:[#allocation5 + $0x110] ss:$12 sps:$4 sm:$0xff]   ;;  %v2754_v26 = vld [vmem:[#allocation5 + $0x348] ss:$12 sps:$4 sm:$0xff]   ;;  %v2767_v29 = vld [vmem:[#allocation5 + $0xf8] ss:$12 sps:$4 sm:$0xff]  }
  0x85   : > { %1370 = vmatpush1.bf16.msra.mxu0 %v2684_v30  ;;  %v2761_v27 = vld [vmem:[#allocation5 + $0x334] ss:$12 sps:$4 sm:$0xff]   ;;  %v2763_v28 = vld [vmem:[#allocation5 + $0x50] ss:$12 sps:$4 sm:$0xff]   ;;  %v2788_v50 = vld [vmem:[#allocation5 + $0x218] ss:$12 sps:$4 sm:$0xff]  }
  0x86   : > { %1371 = vmatprep.subr.bf16.mxu0 %v2688_v31  ;;  %1411 = vmatpush1.bf16.msra.mxu1 %v2687_v32  ;;  %v2759_v30 = vld [vmem:[#allocation5 + $0x330] ss:$12 sps:$4 sm:$0xff]   ;;  %v2768_v32 = vld [vmem:[#allocation5 + $0x38] ss:$12 sps:$4 sm:$0xff]   ;;  %v2813_v6 = vld [vmem:[#allocation5 + $0x1a0] ss:$12 sps:$4 sm:$0xff]  }
  0x87   : > { %1412 = vmatprep.subr.bf16.mxu1 %v2691_v33  ;;  %v2766_v31 = vld [vmem:[#allocation5 + $0x31c] ss:$12 sps:$4 sm:$0xff]   ;;  %v2772_v33 = vld [vmem:[#allocation5 + $0xe0] ss:$12 sps:$4 sm:$0xff]   ;;  %v2804_v4 = vld [vmem:[#allocation5 + $0x3d8] ss:$12 sps:$4 sm:$0xff]  }
  0x88   : > { %v2783_v46 = vld [vmem:[#allocation5 + $0x230] ss:$12 sps:$4 sm:$0xff]   ;;  %s2101_s29 = sshll.u32 %s338_s23, 4  ;;  %s2088_s18 = scalar_lea.sflag [#allocation4], %s3230_s1  ;;  %s2102_s29 = int_to_ptr.vmem [resolvable:$true] %s2101_s29 }
  0x89   : > { %1372 = vmatpush2.bf16.msra.mxu0 %v2690_v34  ;;  %v2764_v34 = vld [vmem:[#allocation5 + $0x318] ss:$12 sps:$4 sm:$0xff]   ;;  %p3374_p0 = scmp.ne.s32.totalorder %s3366_s19, 0  ;;  %s3063_s3 = smov [#allocation10]  }
  0x8a   : > { %1373 = vmatprep.subr.bf16.mxu0 %v2694_v35  ;;  %1413 = vmatpush2.bf16.msra.mxu1 %v2693_v36  ;;  %v2771_v35 = vld [vmem:[#allocation5 + $0x304] ss:$12 sps:$4 sm:$0xff]   ;;  %v2773_v36 = vld [vmem:[#allocation5 + $0x20] ss:$12 sps:$4 sm:$0xff]   ;;  %s2982_s30 = sshll.u32 %s3063_s3, 4  ;;  %s2983_s30 = int_to_ptr.vmem [resolvable:$false] %s2982_s30 }
  0x8b   : > { %1414 = vmatprep.subr.bf16.mxu1 %v2697_v37  ;;  %v2777_v37 = vld [vmem:[#allocation5 + $0xc8] ss:$12 sps:$4 sm:$0xff]   ;;  %s2984_s28 = scalar_lea.vmem %s2983_s30, 256  ;;  %p2985_p1 = scmp.lt.s32.totalorder %s2102_s29, %s2983_s30 }
  0x8d   : > { %1374 = vmatpush2.bf16.msra.mxu0 %v2696_v38  ;;  %v2769_v38 = vld [vmem:[#allocation5 + $0x300] ss:$12 sps:$4 sm:$0xff]  }
  0x8e   : > { %1375 = vmatprep.subr.bf16.mxu0 %v2700_v39  ;;  %1415 = vmatpush2.bf16.msra.mxu1 %v2699_v40  ;;  %v2776_v39 = vld [vmem:[#allocation5 + $0x46c] ss:$12 sps:$4 sm:$0xff]   ;;  %v2778_v40 = vld [vmem:[#allocation5 + $0x8] ss:$12 sps:$4 sm:$0xff]  }
  0x8f   : > { %1416 = vmatprep.subr.bf16.mxu1 %v2703_v41  ;;  %v2782_v41 = vld [vmem:[#allocation5 + $0x2f0] ss:$12 sps:$4 sm:$0xff]  }
  0x91   : > { %1376 = vmatpush2.bf16.msra.mxu0 %v2702_v42  ;;  %v345_v42 = vld [vmem:[%s3234_s21 + $0x28] sm:$0xff] }
  0x92   : > { %1377 = vmatprep.subr.bf16.mxu0 %v2706_v43  ;;  %1417 = vmatpush2.bf16.msra.mxu1 %v2705_v44  ;;  %v2774_v43 = vld [vmem:[#allocation5 + $0x468] ss:$12 sps:$4 sm:$0xff]   ;;  %v3262_v44 = vpack.c.bf16 %v345_v42, %v345_v42  ;;  %v2843_v42 = vld [vmem:[#allocation7 + $0x20] sm:$0xff]  }
  0x93   : > { %1418 = vmatprep.subr.bf16.mxu1 %v2709_v45  ;;  %v2781_v45 = vld [vmem:[#allocation5 + $0x454] ss:$12 sps:$4 sm:$0xff]  }
  0x95   : > { %1378 = vmatpush2.bf16.msra.mxu0 %v2708_v47  ;;  %v2787_v47 = vld [vmem:[#allocation5 + $0x2d8] ss:$12 sps:$4 sm:$0xff]  }
  0x96   : > { %1379 = vmatprep.subr.bf16.mxu0 %v2712_v49  ;;  %1419 = vmatpush2.bf16.msra.mxu1 %v2711_v51  ;;  %v2786_v49 = vld [vmem:[#allocation5 + $0x43c] ss:$12 sps:$4 sm:$0xff]   ;;  %v2792_v51 = vld [vmem:[#allocation5 + $0x2c0] ss:$12 sps:$4 sm:$0xff]  }
  0x97   : > { %1420 = vmatprep.subr.bf16.mxu1 %v2715_v53  ;;  %v2784_v53 = vld [vmem:[#allocation5 + $0x438] ss:$12 sps:$4 sm:$0xff]  }
  0x99   : > { %1380 = vmatpush2.bf16.msra.mxu0 %v2714_v54  ;;  %v2791_v54 = vld [vmem:[#allocation5 + $0x424] ss:$12 sps:$4 sm:$0xff]  }
  0x9a   : > { %1381 = vmatprep.subr.bf16.mxu0 %v2718_v55  ;;  %1421 = vmatpush2.bf16.msra.mxu1 %v2717_v56  ;;  %v2793_v55 = vld [vmem:[#allocation5 + $0x200] ss:$12 sps:$4 sm:$0xff]   ;;  %v2797_v56 = vld [vmem:[#allocation5 + $0x2a8] ss:$12 sps:$4 sm:$0xff]  }
  0x9b   : > { %1422 = vmatprep.subr.bf16.mxu1 %v2721_v57  ;;  %v2789_v57 = vld [vmem:[#allocation5 + $0x420] ss:$12 sps:$4 sm:$0xff]  }
  0x9d   : > { %1382 = vmatpush2.bf16.msra.mxu0 %v2720_v58  ;;  %v2796_v58 = vld [vmem:[#allocation5 + $0x40c] ss:$12 sps:$4 sm:$0xff]  }
  0x9e   : > { %1383 = vmatprep.subr.bf16.mxu0 %v2724_v59  ;;  %1423 = vmatpush2.bf16.msra.mxu1 %v2723_v60  ;;  %v2798_v59 = vld [vmem:[#allocation5 + $0x1e8] ss:$12 sps:$4 sm:$0xff]   ;;  %v2802_v60 = vld [vmem:[#allocation5 + $0x290] ss:$12 sps:$4 sm:$0xff]  }
  0x9f   : > { %1424 = vmatprep.subr.bf16.mxu1 %v2727_v61  ;;  %v2801_v61 = vld [vmem:[#allocation5 + $0x3f4] ss:$12 sps:$4 sm:$0xff]  }
  0xa1   : > { %1384 = vmatpush2.bf16.msra.mxu0 %v2726_v62  ;;  %v2799_v62 = vld [vmem:[#allocation5 + $0x3f0] ss:$12 sps:$4 sm:$0xff]  }
  0xa2   : > { %1385 = vmatprep.subr.bf16.mxu0 %v2730_v0  ;;  %1425 = vmatpush2.bf16.msra.mxu1 %v2729_v63  ;;  %v2803_v63 = vld [vmem:[#allocation5 + $0x1d0] ss:$12 sps:$4 sm:$0xff]   ;;  %v2807_v0 = vld [vmem:[#allocation5 + $0x278] ss:$12 sps:$4 sm:$0xff]  }
  0xa3   : > { %1426 = vmatprep.subr.bf16.mxu1 %v2733_v2  ;;  %v2808_v2 = vld [vmem:[#allocation5 + $0x1b8] ss:$12 sps:$4 sm:$0xff]  }
  0xa5   : > { %1386 = vmatpush2.bf16.msra.mxu0 %v2732_v1  ;;  %v2806_v1 = vld [vmem:[#allocation5 + $0x3dc] ss:$12 sps:$4 sm:$0xff]  }
  0xa6   : > { %1437 = vmatprep.subr.bf16.mxu0 %v2738_v5  ;;  %1427 = vmatpush2.bf16.msra.mxu1 %v2735_v3  ;;  %v2812_v3 = vld [vmem:[#allocation5 + $0x260] ss:$12 sps:$4 sm:$0xff]   ;;  %v2811_v5 = vld [vmem:[#allocation5 + $0x3c4] ss:$12 sps:$4 sm:$0xff]  }
  0xa7   : > { %2399 = vmatprep.subr.bf16.mxu1 %v2742_v8  ;;  %v2809_v8 = vld [vmem:[#allocation5 + $0x3c0] ss:$12 sps:$4 sm:$0xff]  }
  0xa8   : > { %1388 = vmatmul.mubr.bf16.vlgmr.msra.gmra.mxu0 %v3255_v7 }
  0xa9   : > { %1438 = vmatpush1.bf16.msra.mxu0 %v2736_v9  ;;  %1429 = vmatmul.mubr.bf16.vlgmr.msra.gmra.mxu1 %v3257_v10  ;;  %v344_v9 = vld [vmem:[%s3234_s21 + $0x20] sm:$0xff] }
  0xaa   : > { %1439 = vmatprep.subr.bf16.mxu0 %v2741_v11  ;;  %2400 = vmatpush3.bf16.msra.mxu1 %v2743_v12  ;;  %v2816_v11 = vld [vmem:[#allocation5 + $0x484] ss:$12 sps:$4 sm:$0xff]   ;;  %v2818_v12 = vld [vmem:[#allocation5 + $0x188] ss:$12 sps:$4 sm:$0xff]  }
  0xab   : > { %1551 = vmatprep.mubr.bf16.mxu1 %v348_v48  ;;  %2401 = vmatprep.subr.bf16.mxu1 %v2747_v13  ;;  %v2779_v48 = vld [vmem:[#allocation5 + $0x450] ss:$12 sps:$4 sm:$0xff]   ;;  %v2814_v13 = vld [vmem:[#allocation5 + $0x480] ss:$12 sps:$4 sm:$0xff]  }
  0xac   : > { %1469 = vmatprep.mubr.bf16.mxu0 %v3262_v44 }
  0xad   : > { %1440 = vmatpush1.bf16.msra.mxu0 %v2739_v14  ;;  %v3268_v14 = vpack.c.bf16 %v344_v9, %v344_v9 }
  0xae   : > { %1441 = vmatprep.subr.bf16.mxu0 %v2746_v15  ;;  %2402 = vmatpush3.bf16.msra.mxu1 %v2748_v16  ;;  %v2819_v15 = vld [vmem:[#allocation5 + $0x470] ss:$12 sps:$4 sm:$0xff]   ;;  %v2835_v16 = vld [vmem:[#allocation5 + $0x488] ss:$12 sps:$4 sm:$0xff]  }
  0xaf   : > { %2403 = vmatprep.subr.bf16.mxu1 %v2752_v17  ;;  %v346_v17 = vld [vmem:[%s3234_s21 + $0x30] sm:$0xff]  ;;  %s2978_s21 = scalar_lea.vmem %s2102_s29, 128 }
  0xb0   : > { %p2979_p12 = scmp.ne.s32.totalorder %s2102_s29, %s2978_s21  ;;  %p2986_p2 = scmp.lt.s32.totalorder %s2984_s28, %s2978_s21 }
  0xb1   : > { %1442 = vmatpush1.bf16.msra.mxu0 %v2744_v18  ;;  %v3060_v18 = vmov 0.0  }
  0xb2   : > { %1443 = vmatprep.subr.bf16.mxu0 %v2751_v19  ;;  %2404 = vmatpush3.bf16.msra.mxu1 %v2753_v20  ;;  %v3061_v19 = vmov 0   ;;  %v2820_v20 = vld [vmem:[#allocation5 + $0x3b0] ss:$12 sps:$4 sm:$0xff]   ;;  %p2980_p5 = pnand %p2979_p12, %p3374_p0  ;;  %p2987_p11 = por %p2986_p2, %p2985_p1 }
  0xb3   : > { %2405 = vmatprep.subr.bf16.mxu1 %v2757_v21  ;;  %v353_v21 = vpack.c.bf16 %v346_v17, %v346_v17 }
  0xb4   : > { %p2981_p10 = pneg %p2980_p5 }
  0xb5   : > { %1444 = vmatpush1.bf16.msra.mxu0 %v2749_v22  ;;  %v2821_v22 = vld [vmem:[#allocation5 + $0x458] ss:$12 sps:$4 sm:$0xff]  }
  0xb6   : > { %1445 = vmatprep.subr.bf16.mxu0 %v2756_v23  ;;  %2406 = vmatpush3.bf16.msra.mxu1 %v2758_v24  ;;  %v2836_v23 = vld [vmem:[#allocation7 + $0x78] sm:$0xff]   ;;  %p2988_p9 = pnand %p2987_p11, %p2981_p10 }
  0xb7   : > { %2407 = vmatprep.subr.bf16.mxu1 %v2762_v25  ;;  %v2837_v24 = vld [vmem:[#allocation7 + $0x38] sm:$0xff]   ;;  %v2822_v25 = vld [vmem:[#allocation5 + $0x398] ss:$12 sps:$4 sm:$0xff]  }
  0xb9   : > { %1446 = vmatpush1.bf16.msra.mxu0 %v2754_v26  ;;  %v2838_v26 = vld [vmem:[#allocation7 + $0x70] sm:$0xff]  }
  0xba   : > { %1447 = vmatprep.subr.bf16.mxu0 %v2761_v27  ;;  %2408 = vmatpush3.bf16.msra.mxu1 %v2763_v28  ;;  %v2839_v27 = vld [vmem:[#allocation7 + $0x30] sm:$0xff]  }
  0xbb   : > { %2409 = vmatprep.subr.bf16.mxu1 %v2767_v29  ;;  %v2824_v28 = vld [vmem:[#allocation5 + $0x380] ss:$12 sps:$4 sm:$0xff]  }
  0xbc   : > { %v2840_v29 = vld [vmem:[#allocation7 + $0x68] sm:$0xff]  }
  0xbd   : > { %1448 = vmatpush1.bf16.msra.mxu0 %v2759_v30  ;;  %v2825_v30 = vld [vmem:[#allocation5 + $0x428] ss:$12 sps:$4 sm:$0xff]  }
  0xbe   : > { %1449 = vmatprep.subr.bf16.mxu0 %v2766_v31  ;;  %2410 = vmatpush3.bf16.msra.mxu1 %v2768_v32  ;;  %v2841_v31 = vld [vmem:[#allocation7 + $0x28] sm:$0xff]   ;;  %v2826_v32 = vld [vmem:[#allocation5 + $0x368] ss:$12 sps:$4 sm:$0xff]  }
  0xbf   : > { %2411 = vmatprep.subr.bf16.mxu1 %v2772_v33  ;;  %v2827_v33 = vld [vmem:[#allocation5 + $0x410] ss:$12 sps:$4 sm:$0xff]  }
  0xc1   : > { %1450 = vmatpush1.bf16.msra.mxu0 %v2764_v34  ;;  %v2828_v34 = vld [vmem:[#allocation5 + $0x350] ss:$12 sps:$4 sm:$0xff]  }
  0xc2   : > { %1451 = vmatprep.subr.bf16.mxu0 %v2771_v35  ;;  %2412 = vmatpush3.bf16.msra.mxu1 %v2773_v36  ;;  %v2829_v35 = vld [vmem:[#allocation5 + $0x3f8] ss:$12 sps:$4 sm:$0xff]  }
  0xc3   : > { %2413 = vmatprep.subr.bf16.mxu1 %v2777_v37  ;;  %v2830_v36 = vld [vmem:[#allocation5 + $0x338] ss:$12 sps:$4 sm:$0xff]   ;;  %v2831_v37 = vld [vmem:[#allocation5 + $0x3e0] ss:$12 sps:$4 sm:$0xff]  }
  0xc5   : > { %1452 = vmatpush1.bf16.msra.mxu0 %v2769_v38  ;;  %v2832_v38 = vld [vmem:[#allocation5 + $0x320] ss:$12 sps:$4 sm:$0xff]  }
  0xc6   : > { %1453 = vmatprep.subr.bf16.mxu0 %v2776_v39  ;;  %2414 = vmatpush3.bf16.msra.mxu1 %v2778_v40  ;;  %v2833_v39 = vld [vmem:[#allocation5 + $0x3c8] ss:$12 sps:$4 sm:$0xff]  }
  0xc7   : > { %2421 = vmatprep.subr.bf16.mxu1 %v2782_v41  ;;  %v2834_v40 = vld [vmem:[#allocation5 + $0x308] ss:$12 sps:$4 sm:$0xff]   ;;  %v2842_v41 = vld [vmem:[#allocation7 + $0x60] sm:$0xff]  }
  0xc9   : > { %1454 = vmatpush2.bf16.msra.mxu0 %v2774_v43  ;;  %1552 = vmatmul.mubr.bf16.vlgmr.msra.gmra.mxu1 %v3255_v7  ;;  %v2817_v7 = vld [vmem:[#allocation5 + $0x248] ss:$12 sps:$4 sm:$0xff]  }
  0xca   : > { %1455 = vmatprep.subr.bf16.mxu0 %v2781_v45  ;;  %2422 = vmatpush3.bf16.msra.mxu1 %v2783_v46  ;;  %v2844_v43 = vld [vmem:[#allocation7 + $0x58] sm:$0xff]   ;;  %v2846_v45 = vld [vmem:[#allocation7 + $0x50] sm:$0xff]  }
  0xcb   : > { %1591 = vmatprep.mubr.bf16.mxu1 %v3250_v52  ;;  %2423 = vmatprep.subr.bf16.mxu1 %v2787_v47  ;;  %v2794_v52 = vld [vmem:[#allocation5 + $0x408] ss:$12 sps:$4 sm:$0xff]   ;;  %v2848_v47 = vld [vmem:[#allocation7 + $0x48] sm:$0xff]  }
  0xcc   : > { %v2847_v46 = vld [vmem:[#allocation7 + $0x10] sm:$0xff]  }
  0xcd   : > { %1456 = vmatpush2.bf16.msra.mxu0 %v2779_v48  ;;  %v2849_v48 = vld [vmem:[#allocation7 + $0x8] sm:$0xff]  }
  0xce   : > { %1457 = vmatprep.subr.bf16.mxu0 %v2786_v49  ;;  %2424 = vmatpush3.bf16.msra.mxu1 %v2788_v50  ;;  %v2850_v49 = vld [vmem:[#allocation7 + $0x40] sm:$0xff]  }
  0xcf   : > { %2425 = vmatprep.subr.bf16.mxu1 %v2792_v51  ;;  %v2851_v50 = vld [vmem:[#allocation7] sm:$0xff]   ;;  %v2852_v51 = vld [vmem:[#allocation7 + $0xb8] sm:$0xff]  }
  0xd1   : > { %1458 = vmatpush2.bf16.msra.mxu0 %v2784_v53  ;;  %v2853_v53 = vld [vmem:[#allocation7 + $0xb0] sm:$0xff]  }
  0xd2   : > { %1459 = vmatprep.subr.bf16.mxu0 %v2791_v54  ;;  %2426 = vmatpush3.bf16.msra.mxu1 %v2793_v55  ;;  %v2854_v54 = vld [vmem:[#allocation7 + $0xa8] sm:$0xff]   ;;  %v2855_v55 = vld [vmem:[#allocation7 + $0xa0] sm:$0xff]  }
  0xd3   : > { %2427 = vmatprep.subr.bf16.mxu1 %v2797_v56  ;;  %v2856_v56 = vld [vmem:[#allocation7 + $0x98] sm:$0xff]  }
  0xd5   : > { %1460 = vmatpush2.bf16.msra.mxu0 %v2789_v57  ;;  %v2857_v57 = vld [vmem:[#allocation7 + $0x90] sm:$0xff]  }
  0xd6   : > { %1461 = vmatprep.subr.bf16.mxu0 %v2796_v58  ;;  %2428 = vmatpush3.bf16.msra.mxu1 %v2798_v59  ;;  %v2858_v58 = vld [vmem:[#allocation7 + $0x88] sm:$0xff]   ;;  %v2859_v59 = vld [vmem:[#allocation7 + $0x80] sm:$0xff]  }
  0xd7   : > { %2429 = vmatprep.subr.bf16.mxu1 %v2802_v60  ;;  %v552_v60 = vlaneseq }
  0xd9   : > { %1462 = vmatpush2.bf16.msra.mxu0 %v2794_v52  ;;  %v553_v52 = vshrl.u32 %v552_v60, 7  ;;  %v2861_v60 = vld [vmem:[#allocation8 + $0x30] sm:$0xff]  }
  0xda   : > { %1463 = vmatprep.subr.bf16.mxu0 %v2801_v61  ;;  %2430 = vmatpush3.bf16.msra.mxu1 %v2803_v63 }
  0xdb   : > { %2431 = vmatprep.subr.bf16.mxu1 %v2807_v0  ;;  %v554_v61 = vsub.s32 0, %v553_v52  ;;  %v558_v63 = vsub.s32 1, %v553_v52 }
  0xdd   : > { %1464 = vmatpush2.bf16.msra.mxu0 %v2799_v62  ;;  %v550_v62 = vld [vmem:[%s3347_s2] sm:$0x7] }
  0xde   : > { %1465 = vmatprep.subr.bf16.mxu0 %v2806_v1  ;;  %2432 = vmatpush3.bf16.msra.mxu1 %v2808_v2  ;;  %v555_v0 = vrot.slane %v550_v62, %v554_v61  ;;  %v559_v1 = vrot.slane %v550_v62, %v558_v63  ;;  %v2863_v61 = vld [vmem:[#allocation8 + $0x20] sm:$0xff]   ;;  %v2865_v63 = vld [vmem:[#allocation8 + $0x10] sm:$0xff]  }
  0xdf   : > { %2433 = vmatprep.subr.bf16.mxu1 %v2812_v3 }
  0xe1   : > { %1466 = vmatpush2.bf16.msra.mxu0 %v2804_v4 }
  0xe2   : > { %1467 = vmatprep.subr.bf16.mxu0 %v2811_v5  ;;  %2434 = vmatpush3.bf16.msra.mxu1 %v2813_v6 }
  0xe3   : > { %2435 = vmatprep.subr.bf16.mxu1 %v2817_v7 }
  0xe5   : > { %1468 = vmatpush2.bf16.msra.mxu0 %v2809_v8 }
  0xe6   : > { %1492 = vmatprep.subr.bf16.mxu0 %v2816_v11  ;;  %2436 = vmatpush3.bf16.msra.mxu1 %v2818_v12 }
  0xe7   : > { %2507 = vmatprep.subr.bf16.mxu1 %v3060_v18 }
  0xe8   : > { %1470 = vmatmul.mubr.bf16.vlgmr.msra.gmra.mxu0 %v3268_v14 }
  0xe9   : > { %1493 = vmatpush1.bf16.msra.mxu0 %v2814_v13  ;;  %1510 = vmatprep.mubr.bf16.mxu0 %v3061_v19 }
  0xea   : > { %1592 = vmatmul.mubr.bf16.vlgmr.msra.gmra.mxu1 %v3257_v10  ;;  %2443 = vmatprep.subr.bf16.mxu0 %v2819_v15  ;;  %v2823_v10 = vld [vmem:[#allocation5 + $0x440] ss:$12 sps:$4 sm:$0xff]  }
  0xeb   : > { %2508 = vmatpush3.bf16.msra.mxu1 %v2835_v16  ;;  %2509 = vmatprep.mubr.msk.bf16.mxu1 %vm3062_vm1, %v3060_v18 }
  0xec   : > { %2467 = vmatprep.subr.bf16.mxu1 %v2836_v23 }
  0xf0   : > { %2359 = vmatmul.mubr.msk.bf16.vlgmr.msra.gmra.mxu0 %vm1351_vm0, %v353_v21 }
  0xf1   : > { %2444 = vmatpush3.bf16.msra.mxu0 %v2820_v20  ;;  %1631 = vmatprep.mubr.bf16.mxu0 %v3262_v44  ;;  %v2845_v44 = vld [vmem:[#allocation7 + $0x18] sm:$0xff]  }
  0xf2   : > { %2445 = vmatprep.subr.bf16.mxu0 %v2821_v22  ;;  %2510 = vmatmul.mubr.msk.bf16.vlgmr.msra.gmra.mxu1 %vm1351_vm0, %v353_v21 }
  0xf3   : > { %2468 = vmatpush3.bf16.msra.mxu1 %v2837_v24 }
  0xf4   : > { %2469 = vmatprep.subr.bf16.mxu1 %v2838_v26 }
  0xf5   : > { %2446 = vmatpush3.bf16.msra.mxu0 %v2822_v25 }
  0xf6   : > { %2447 = vmatprep.subr.bf16.mxu0 %v2823_v10 }
  0xf7   : > { %2470 = vmatpush3.bf16.msra.mxu1 %v2839_v27 }
  0xf8   : > { %2471 = vmatprep.subr.bf16.mxu1 %v2840_v29 }
  0xf9   : > { %2448 = vmatpush3.bf16.msra.mxu0 %v2824_v28 }
  0xfa   : > { %2449 = vmatprep.subr.bf16.mxu0 %v2825_v30 }
  0xfb   : > { %2472 = vmatpush3.bf16.msra.mxu1 %v2841_v31 }
  0xfc   : > { %2473 = vmatprep.subr.bf16.mxu1 %v2842_v41 }
  0xfd   : > { %2450 = vmatpush3.bf16.msra.mxu0 %v2826_v32 }
  0xfe   : > { %2451 = vmatprep.subr.bf16.mxu0 %v2827_v33 }
  0xff   : > { %2474 = vmatpush3.bf16.msra.mxu1 %v2843_v42 }
 0x100   : > { %2475 = vmatprep.subr.bf16.mxu1 %v2844_v43 }
 0x101   : > { %2452 = vmatpush3.bf16.msra.mxu0 %v2828_v34 }
 0x102   : > { %2453 = vmatprep.subr.bf16.mxu0 %v2829_v35 }
 0x103   : > { %2476 = vmatpush3.bf16.msra.mxu1 %v2845_v44  ;;  %v562_v44 = vsub.s32 2, %v553_v52  ;;  %v2862_v52 = vld [vmem:[#allocation8 + $0x28] sm:$0xff]  }
 0x104   : > { %2477 = vmatprep.subr.bf16.mxu1 %v2846_v45 }
 0x105   : > { %2454 = vmatpush3.bf16.msra.mxu0 %v2830_v36  ;;  %v563_v45 = vrot.slane %v550_v62, %v562_v44  ;;  %v2864_v62 = vld [vmem:[#allocation8 + $0x18] sm:$0xff]  }
 0x106   : > { %2455 = vmatprep.subr.bf16.mxu0 %v2831_v37 }
 0x107   : > { %2478 = vmatpush3.bf16.msra.mxu1 %v2847_v46 }
 0x108   : > { %2479 = vmatprep.subr.bf16.mxu1 %v2848_v47 }
 0x109   : > { %2456 = vmatpush3.bf16.msra.mxu0 %v2832_v38 }
 0x10a   : > { %2457 = vmatprep.subr.bf16.mxu0 %v2833_v39 }
 0x10b   : > { %2480 = vmatpush3.bf16.msra.mxu1 %v2849_v48 }
 0x10c   : > { %2481 = vmatprep.subr.bf16.mxu1 %v2850_v49 }
 0x10d   : > { %2458 = vmatpush3.bf16.msra.mxu0 %v2834_v40 }
 0x10e   : > { %2513 = vmatprep.subr.bf16.mxu0 %v3060_v18 }
 0x10f   : > { %2482 = vmatpush3.bf16.msra.mxu1 %v2851_v50 }
 0x110   : > { %1632 = vmatmul.mubr.bf16.vlgmr.msra.gmra.mxu0 %v3268_v14  ;;  %2533 = vmatprep.subr.bf16.mxu1 %v3060_v18 }
 0x111   : > { %2529 = vmatprep.mubr.msk.bf16.mxu0 %vm3062_vm1, %v3060_v18  ;;  %2514 = vmatpush3.bf16.msra.mxu0 %v2852_v51 }
 0x112   : > { %2515 = vmatprep.subr.bf16.mxu0 %v3060_v18 }
 0x115   : > { %2516 = vmatpush3.bf16.msra.mxu0 %v2853_v53 }
 0x116   : > { %2517 = vmatprep.subr.bf16.mxu0 %v3060_v18 }
 0x119   : > { %2518 = vmatpush3.bf16.msra.mxu0 %v2854_v54 }
 0x11a   : > { %2519 = vmatprep.subr.bf16.mxu0 %v3060_v18 }
 0x11d   : > { %2520 = vmatpush3.bf16.msra.mxu0 %v2855_v55 }
 0x11e   : > { %2521 = vmatprep.subr.bf16.mxu0 %v3060_v18 }
 0x121   : > { %2522 = vmatpush3.bf16.msra.mxu0 %v2856_v56 }
 0x122   : > { %2523 = vmatprep.subr.bf16.mxu0 %v3060_v18 }
 0x125   : > { %2524 = vmatpush3.bf16.msra.mxu0 %v2857_v57 }
 0x126   : > { %2525 = vmatprep.subr.bf16.mxu0 %v3060_v18 }
 0x129   : > { %2526 = vmatpush3.bf16.msra.mxu0 %v2858_v58 }
 0x12a   : > { %2527 = vmatprep.subr.bf16.mxu0 %v3060_v18 }
 0x12d   : > { %2528 = vmatpush3.bf16.msra.mxu0 %v2859_v59  ;;  %v2860_v59 = vld [vmem:[#allocation8 + $0x38] sm:$0xff]  }
 0x168   : > { %v1389_v2 = vpop.f32.mrf.mxu0 }
 0x169   : > { %v1390_v3 = vadd.f32 %v1389_v2, %v555_v0  ;;  %v1430_v5 = vpop.f32.mrf.mxu1  ;;  %v2866_v0 = vld [vmem:[#allocation8 + $0x8] sm:$0xff]  }
 0x16a   : > { %v1391_v4 = vpop.f32.mrf.mxu0 }
 0x16b   : > { %v1392_v6 = vadd.f32 %v1391_v4, %v559_v1  ;;  %v1431_v7 = vadd.f32 %v1430_v5, %v1390_v3  ;;  %v1432_v9 = vpop.f32.mrf.mxu1  ;;  %v2867_v1 = vld [vmem:[#allocation8] sm:$0xff]  }
 0x16c   : > { %v1393_v8 = vpop.f32.mrf.mxu0 }
 0x16d   : > { %v1433_v11 = vadd.f32 %v1432_v9, %v1392_v6  ;;  %v1434_v13 = vpop.f32.mrf.mxu1 }
 0x16e   : > { %v1394_v12 = vpop.f32.mrf.mxu0 }
 0x16f   : > { %v1435_v14 = vpop.f32.mrf.mxu1 }
 0x189   : > { %v2415_v15 = vpop.f32.mrf.mxu1 }
 0x18b   : > { %v2416_v16 = vpop.f32.mrf.mxu1 }
 0x18c   : > { %v2417_v17 = vadd.f32 %v2416_v16, %v2415_v15 }
 0x18d   : > { %v2418_v19 = vpop.f32.mrf.mxu1 }
 0x18e   : > { %v1554_v46 = vadd.f32 %v2417_v17, %v563_v45 }
 0x18f   : > { %v2419_v20 = vpop.f32.mrf.mxu1 }
 0x1a8   : > { %v1471_v21 = vpop.f32.mrf.mxu0 }
 0x1a9   : > { %v1472_v27 = vadd.f32 %v1471_v21, %v1431_v7  ;;  %v2361_v7 = vld [vmem:[%s3349_s4] ss:$0 sm:$0xff] }
 0x1aa   : > { %v1473_v22 = vpop.f32.mrf.mxu0  ;;  %v2437_v23 = vpop.f32.mrf.mxu1 }
 0x1ab   : > { %v1474_v30 = vadd.f32 %v1473_v22, %v1433_v11 }
 0x1ac   : > { %v1475_v24 = vpop.f32.mrf.mxu0  ;;  %v2438_v25 = vpop.f32.mrf.mxu1 }
 0x1ad   : > { %v2439_v47 = vadd.f32 %v2438_v25, %v2437_v23 }
 0x1ae   : > { %v1476_v26 = vpop.f32.mrf.mxu0  ;;  %v2440_v10 = vpop.f32.mrf.mxu1 }
 0x1af   : > { %v1594_v50 = vadd.f32 %v2439_v47, %v1554_v46 }
 0x1b0   : > { %v1512_v28 = vpop.f32.mrf.mxu0  ;;  %v2441_v29 = vpop.f32.mrf.mxu1 }
 0x1b1   : > { %v1513_v31 = vadd.f32 %v1512_v28, %v1472_v27 }
 0x1b2   : > { %v1514_v32 = vpop.f32.mrf.mxu0  ;;  %v1673_v33 = vpop.f32.mrf.mxu1 }
 0x1b3   : > { %v1515_v34 = vadd.f32 %v1514_v32, %v1474_v30  ;;  %v1679_v35 = vmax.f32 %v1513_v31, 0.0 }
 0x1b4   : > { %v1516_v36 = vpop.f32.mrf.mxu0  ;;  %v2511_v37 = vpop.f32.mrf.mxu1 }
 0x1b5   : > { %v1680_v38 = vmax.f32 %v1515_v34, 0.0  ;;  %v1682_v42 = vpack.c.bf16 %v1679_v35, %v1679_v35 }
 0x1b6   : > { %v1517_v39 = vpop.f32.mrf.mxu0  ;;  %v1676_v40 = vpop.f32.mrf.mxu1 }
 0x1b7   : > { %v1683_v41 = vpack.c.bf16 %v1680_v38, %v1680_v38 }
 0x1b8   : > { %v2512_v43 = vpop.f32.mrf.mxu1 }
 0x1b9   : > { %1916 = vmatprep.mubr.bf16.mxu1 %v1683_v41 }
 0x1ba   : > { %1917 = vmatmul.mubr.bf16.vlgmr.msra.gmra.mxu1 %v1682_v42 }
 0x1bb   : > { %2549 = vmatprep.mubr.msk.bf16.mxu1 %vm3062_vm1, %v3060_v18  ;;  %2534 = vmatpush3.bf16.msra.mxu1 %v2860_v59 }
 0x1bc   : > { %2535 = vmatprep.subr.bf16.mxu1 %v3060_v18 }
 0x1bf   : > { %2536 = vmatpush3.bf16.msra.mxu1 %v2861_v60 }
 0x1c0   : > { %2537 = vmatprep.subr.bf16.mxu1 %v3060_v18 }
 0x1c3   : > { %2538 = vmatpush3.bf16.msra.mxu1 %v2862_v52 }
 0x1c4   : > { %2539 = vmatprep.subr.bf16.mxu1 %v3060_v18 }
 0x1c7   : > { %2540 = vmatpush3.bf16.msra.mxu1 %v2863_v61 }
 0x1c8   : > { %2541 = vmatprep.subr.bf16.mxu1 %v3060_v18 }
 0x1cb   : > { %2542 = vmatpush3.bf16.msra.mxu1 %v2864_v62 }
 0x1cc   : > { %2543 = vmatprep.subr.bf16.mxu1 %v3060_v18 }
 0x1cf   : > { %2544 = vmatpush3.bf16.msra.mxu1 %v2865_v63 }
 0x1d0   : > { %v2459_v48 = vpop.f32.mrf.mxu0  ;;  %2545 = vmatprep.subr.bf16.mxu1 %v3060_v18 }
 0x1d2   : > { %v2460_v49 = vpop.f32.mrf.mxu0 }
 0x1d3   : > { %v2461_v51 = vadd.f32 %v2460_v49, %v2459_v48  ;;  %2546 = vmatpush3.bf16.msra.mxu1 %v2866_v0 }
 0x1d4   : > { %v2462_v53 = vpop.f32.mrf.mxu0  ;;  %2547 = vmatprep.subr.bf16.mxu1 %v3060_v18  ;;  %v2386_v18 = vld [vmem:[%s3351_s6] ss:$0 sm:$0xff] }
 0x1d5   : > { %v1634_v54 = vadd.f32 %v2461_v51, %v1594_v50 }
 0x1d6   : > { %v2463_v55 = vpop.f32.mrf.mxu0 }
 0x1d7   : > { %v1674_v56 = vadd.f32 %v1673_v33, %v1634_v54  ;;  %2548 = vmatpush3.bf16.msra.mxu1 %v2867_v1 }
 0x1d9   : > { %v1681_v57 = vmax.f32 %v1674_v56, 0.0 }
 0x1db   : > { %v1684_v58 = vpack.c.bf16 %v1681_v57, %v1681_v57 }
 0x1dd   : > { %2530 = vmatmul.mubr.bf16.vlgmr.msra.gmra.mxu0 %v1684_v58 }
 0x27a   : > { %v2483_v2 = vpop.f32.mrf.mxu1 }
 0x27c   : > { %v2484_v3 = vpop.f32.mrf.mxu1 }
 0x27d   : > { %v2485_v6 = vadd.f32 %v2484_v3, %v2483_v2 }
 0x27e   : > { %v2486_v4 = vpop.f32.mrf.mxu1 }
 0x27f   : > { %v1919_v8 = vadd.f32 %v2485_v6, %v2361_v7 }
 0x280   : > { %v2487_v5 = vpop.f32.mrf.mxu1 }
 0x29d   : > { %v1958_v9 = vpop.f32.mrf.mxu0 }
 0x29e   : > { %v1959_v11 = vadd.f32 %v1958_v9, %v1919_v8 }
 0x29f   : > { %v2531_v12 = vpop.f32.mrf.mxu0 }
 0x2a0   : > { %v1964_v13 = vmax.f32 %v1959_v11, 0.0 }
 0x2a1   : > { %v1961_v14 = vpop.f32.mrf.mxu0 }
 0x2a2   : > { %v1965_v15 = vpack.c.bf16 %v1964_v13, %v1964_v13 }
 0x2a3   : > { %v2532_v16 = vpop.f32.mrf.mxu0 }
 0x2a4   : > { %2550 = vmatmul.mubr.bf16.vlgmr.msra.gmra.mxu1 %v1965_v15 }
 0x364   : > { %v2071_v17 = vpop.f32.mrf.mxu1 }
 0x365   : > { %v2072_v19 = vadd.f32 %v2386_v18, %v2071_v17 }
 0x366   : > { %v2551_v20 = vpop.f32.mrf.mxu1 }
 0x367   : > { %2077 = vmax.xlane.f32.xlu0 %v2072_v19 }
 0x368   : > { %v2074_v21 = vpop.f32.mrf.mxu1 }
 0x36a   : > { %v2552_v22 = vpop.f32.mrf.mxu1 }
 0x3f0   : > { %v2078_v23 = vpop.xlane.xlu0 %2077 }
 0x3f1   : > { %v2079_v24 = vsub.f32 %v2072_v19, %v2078_v23 }
 0x3f3   : > { %v2080_v25 = vmul.f32 1.442695, %v2079_v24 }
 0x3f5   : > { %2868 = vpow2.f32 %v2080_v25 }
 0x402   : > { %v2869_v26 = vpop.eup %2868 }
 0x403   : > { %2082 = vadd.xlane.f32.xlu0 %v2869_v26 }
 0x48c   : > { %v2083_v10 = vpop.xlane.xlu0 %2082 }
 0x48d   : > { %2870 = vrcp.f32 %v2083_v10 }
 0x49a   : > { %v2871_v27 = vpop.eup %2870 }
 0x49b   : > { %v2085_v28 = vmul.f32 %v2871_v27, %v2869_v26 }
 0x49d   : > { %2086 = vst [vmem:[%s338_s23] sm:$0xff] %v2085_v28 }
 0x49e   : > { %2991 = shalt.err (!%p2988_p9)
}
 0x49f   : > { %s2992_s9 = scalar_lea.hbm %s2099_s17, 128  ;;  %s2996_s11 = scalar_lea.hbm %s3352_s7, 256 }
 0x4a0   : > { %p2993_p13 = scmp.ne.s32.totalorder %s2099_s17, %s2992_s9  ;;  %p2997_p8 = scmp.lt.s32.totalorder %s2099_s17, %s3352_s7 }
 0x4a1   : > { %p2998_p6 = scmp.lt.s32.totalorder %s2996_s11, %s2992_s9 }
 0x4a2   : > { %p2994_p7 = pnand %p2993_p13, %p3374_p0 }
 0x4a3   : > { %p2999_p3 = por %p2998_p6, %p2997_p8 }
 0x4a4   : > { %p2995_p4 = pneg %p2994_p7 }
 0x4a6   : > { %p3000_p12 = pnand %p2999_p3, %p2995_p4 }
 0x4a8   : > { %3003 = shalt.err (!%p3000_p12)
}
 0x4a9   : > { %2570 = dma.vmem_to_hbm [thread:$0]  (%p3374_p0), %s2102_s29, 128, %s2099_s17, %s2088_s18  }
 0x4aa PF: > { %s2113_s22 = sand.u32 1, %s3038_s24   ;;  %p3375_p5 = scmp.ne.s32.totalorder %s3360_s8, 0 }
 0x4ab   : > { %p3376_p10 = scmp.ge.s32.totalorder %s3050_s27, 2  ;;  %s2114_s23 = scalar_lea.sflag [#allocation4], %s2113_s22 }
 0x4ad   : > { %p2587_p1 = pnand %p3376_p10, %p3375_p5 }
 0x4af   : > { %p2588_p2 = pneg %p2587_p1 }
 0x4b1   : > { %3033 = dma.done.wait (%p2588_p2), %s2114_s23, 128  }
 0x4b2   : > { %3035 = vsyncadd (%p2588_p2), %s2114_s23, 4294967168  ;;  %p22_p11 = scmp.ge.s32.totalorder %s3176_s13, 4   ;;  %s3377_s24 = smov %s3042_s25 }
 0x4b3   : > { %s3378_s25 = smov %s3046_s26  ;;  %s3379_s26 = smov %s3194_s12 }
 0x4b4   : > { %s3380_s27 = smov %s3176_s13  ;;  %24 = sbr.rel (!%p22_p11) target bundleno = 10 (0xa), region = 105 }
 0x4b9   :  { %2119 = vsyncpa [#allocation3], 1 }
 0x4ba   :  { %2121 = vsyncpa [#allocation3 + $0x1], 1 }
 0x4bb   :  { %2122 = vsyncpa [#allocation6], 1 }
 0x4bc   :  { %2123 = vsyncpa [#allocation9], 1 }
 0x4bd   :  { %2124 = vsyncpa [#allocation4], 1 }
 0x4be   :  { %2126 = vsyncpa [#allocation4 + $0x1], 1 }

</bundles_post_ra>
